<compile_context>
chip_gen: v6e
topology: v6e:2x2x1
jax: 0.10.0
libtpu: 0.0.40
codegen_flags: <defaults>
</compile_context>

<pallas_src>
import numpy as np
import jax
import jax.numpy as jnp
from jax import lax
from jax.experimental import pallas as pl
from jax.experimental.pallas import tpu as pltpu


# ----------------------------------------------------------------------------
# Pallas kernel: one batch tile per grid step, everything fused.
# ----------------------------------------------------------------------------
def spherical_conv_kernel(x_ref, hf_ref, hinv_ref, wr_ref, wi_ref, b_ref, o_ref):
    bt, cc, p_pad = x_ref.shape                 # batch tile, in channels, padded spatial
    _, d, _ = o_ref.shape                       # out channels
    lm2 = hf_ref.shape[1]                       # 2 * LM_pad
    lm_pad = lm2 // 2

    # forward spherical transform (a[j] and conj already folded into Hf):
    # one stacked real/imag dot, full padded contraction width (lane-aligned).
    xb = x_ref[...].reshape(bt * cc, p_pad).astype(jnp.bfloat16)
    c1 = jnp.dot(xb, hf_ref[...], preferred_element_type=jnp.float32)   # (bt*C, 2*LM_pad)
    c1 = c1.reshape(bt, cc, lm2)
    c1r = c1[:, :, :lm_pad]                     # sum a*x*Re(Y)   (bt, C, LM_pad)
    c1t = c1[:, :, lm_pad:]                     # sum a*x*Im(Y);  conj => c1i = -c1t

    # spherical conv: per-(l,m) complex channel mix (mult folded into wr/wi).
    # Bounded accumulation over c keeps live vregs small at larger channel counts.
    wr = wr_ref[...]                            # (D, C, LM_pad)
    wi = wi_ref[...]
    c2r = jnp.zeros((bt, d, lm_pad), jnp.float32)
    c2i = jnp.zeros((bt, d, lm_pad), jnp.float32)
    for ci in range(cc):
        c1r_c = c1r[:, ci, :][:, None, :]       # (bt, 1, LM_pad)
        c1t_c = c1t[:, ci, :][:, None, :]
        wr_c = wr[:, ci, :][None]               # (1, D, LM_pad)
        wi_c = wi[:, ci, :][None]
        c2r = c2r + wr_c * c1r_c + wi_c * c1t_c
        c2i = c2i + wi_c * c1r_c - wr_c * c1t_c

    # inverse transform (real part): one stacked dot; the -Im(Y) sign is inside Hinv.
    c2 = jnp.concatenate([c2r, c2i], axis=-1).reshape(bt * d, lm2).astype(jnp.bfloat16)
    y = jnp.dot(c2, hinv_ref[...], preferred_element_type=jnp.float32)  # (bt*D, P_pad)

    o_ref[...] = (y.reshape(bt, d, p_pad) + b_ref[...][None]).astype(o_ref.dtype)


# ----------------------------------------------------------------------------
# One-time parameter preprocessing (hoisted out of the per-call path)
# ----------------------------------------------------------------------------
def prepare_spherical_conv_params(a, harm_r, harm_i, w_r, w_i, mult, bias):
    L, M, n, _ = harm_r.shape
    D, C, _ = w_r.shape
    P = n * n
    P_pad = ((P + 127) // 128) * 128            # lane-dense spatial width
    LM = L * M
    LM_pad = ((LM + 127) // 128) * 128          # lane-dense harmonic-index width

    yr = harm_r.reshape(LM, P).astype(jnp.float32)
    yi = harm_i.reshape(LM, P).astype(jnp.float32)

    # quadrature weights a[j] broadcast over phi (k inner), folded into forward harmonics
    a_flat = jnp.repeat(a.astype(jnp.float32), n)                        # (P,)

    # forward slab, pre-transposed (no in-kernel transpose): (P_pad, 2*LM_pad)
    fr = (yr * a_flat[None, :]).T                                        # (P, LM)
    fi = (yi * a_flat[None, :]).T
    pad_f = lambda h: jnp.pad(h, ((0, P_pad - P), (0, LM_pad - LM)))
    hf = jnp.concatenate([pad_f(fr), pad_f(fi)], axis=1).astype(jnp.bfloat16)

    # inverse slab, -Im sign pre-folded: (2*LM_pad, P_pad)
    pad_i = lambda h: jnp.pad(h, ((0, LM_pad - LM), (0, P_pad - P)))
    hinv = jnp.concatenate([pad_i(yr), pad_i(-yi)], axis=0).astype(jnp.bfloat16)

    # fold mult[l] into the complex weights, expand over m (l-major like LM), pad LM
    wr_lm = jnp.repeat((w_r * mult[None, None, :]).astype(jnp.float32), M, axis=2)
    wi_lm = jnp.repeat((w_i * mult[None, None, :]).astype(jnp.float32), M, axis=2)
    wr_lm = jnp.pad(wr_lm, ((0, 0), (0, 0), (0, LM_pad - LM)))           # (D, C, LM_pad)
    wi_lm = jnp.pad(wi_lm, ((0, 0), (0, 0), (0, LM_pad - LM)))

    bias2 = bias.reshape(D, 1).astype(jnp.float32)

    return dict(hf=hf, hinv=hinv, wr=wr_lm, wi=wi_lm, bias=bias2,
                n=n, P=P, P_pad=P_pad, LM_pad=LM_pad, C=C, D=D)


def _batch_tile(B, C, target_rows=256):
    """Batch tile: keep grid >= 2 when B >= 2 (pipelining / megacore) while targeting
    ~target_rows MXU rows per forward dot (256 on v6e/v7x; 128 would suit v5e)."""
    if B <= 1:
        return 1
    cap = max(1, min(target_rows // max(C, 1), B // 2))
    best = 1
    for bt in range(1, cap + 1):
        if B % bt == 0:
            best = bt
    return best


# ----------------------------------------------------------------------------
# Wrapper: layout glue + pallas_call
# ----------------------------------------------------------------------------
def spherical_conv_pallas(x, params):
    B, C, n, _ = x.shape
    assert n == params["n"] and C == params["C"]
    D, P, P_pad, LM_pad = params["D"], params["P"], params["P_pad"], params["LM_pad"]

    bt = _batch_tile(B, C)
    grid = (B // bt,)

    # (B, C, P) zero-padded to the lane-dense contraction width
    x3 = jnp.pad(x.reshape(B, C, P), ((0, 0), (0, 0), (0, P_pad - P)))

    # VMEM budget: double-buffered blocks + headroom, capped below v7x physical VMEM.
    block_bytes = (bt * C * P_pad * 4 + bt * D * P_pad * 4
                   + P_pad * 2 * LM_pad * 2 + 2 * LM_pad * P_pad * 2
                   + 2 * D * C * LM_pad * 4 + D * 128 * 4)
    vmem_limit = int(min(48 << 20, max(16 << 20, 4 * block_bytes)))

    out = pl.pallas_call(
        spherical_conv_kernel,
        out_shape=jax.ShapeDtypeStruct((B, D, P_pad), jnp.float32),
        grid=grid,
        in_specs=[
            pl.BlockSpec((bt, C, P_pad), lambda i: (i, 0, 0)),        # x (batch tiled)
            pl.BlockSpec((P_pad, 2 * LM_pad), lambda i: (0, 0)),      # forward harmonics
            pl.BlockSpec((2 * LM_pad, P_pad), lambda i: (0, 0)),      # inverse harmonics
            pl.BlockSpec((D, C, LM_pad), lambda i: (0, 0, 0)),        # weight real (mult folded)
            pl.BlockSpec((D, C, LM_pad), lambda i: (0, 0, 0)),        # weight imag (mult folded)
            pl.BlockSpec((D, 1), lambda i: (0, 0)),                   # bias
        ],
        out_specs=pl.BlockSpec((bt, D, P_pad), lambda i: (i, 0, 0)),
        compiler_params=pltpu.CompilerParams(
            dimension_semantics=("parallel",),
            vmem_limit_bytes=vmem_limit),
    )(x3, params["hf"], params["hinv"], params["wr"], params["wi"], params["bias"])

    return out[:, :, :P].reshape(B, D, n, n)


# ----------------------------------------------------------------------------
# Pure-JAX reference (real/imag split) for validation
# ----------------------------------------------------------------------------
def spherical_conv_ref(x, a, harm_r, harm_i, w_r, w_i, mult, bias):
    hcr, hci = harm_r, -harm_i
    hp = jax.lax.Precision.HIGHEST
    c1r = jnp.einsum('bcjk,j,lmjk->bclm', x, a, hcr, precision=hp)
    c1i = jnp.einsum('bcjk,j,lmjk->bclm', x, a, hci, precision=hp)
    c2r = (jnp.einsum('bclm,dcl->bdlm', c1r, w_r, precision=hp)
           - jnp.einsum('bclm,dcl->bdlm', c1i, w_i, precision=hp)) * mult[None, None, :, None]
    c2i = (jnp.einsum('bclm,dcl->bdlm', c1i, w_r, precision=hp)
           + jnp.einsum('bclm,dcl->bdlm', c1r, w_i, precision=hp)) * mult[None, None, :, None]
    y = (jnp.einsum('bdlm,lmjk->bdjk', c2r, harm_r, precision=hp)
         - jnp.einsum('bdlm,lmjk->bdjk', c2i, harm_i, precision=hp))
    return y + bias[None]


# ----------------------------------------------------------------------------
# Parameter construction (deterministic; synthetic where no closed form needed)
# ----------------------------------------------------------------------------
def dh_aj(bandwidth):
    """Driscoll-Healy quadrature weights a_j, shape (2*bandwidth,)."""
    n = 2 * bandwidth
    j = jnp.arange(n, dtype=jnp.float32)
    theta = jnp.pi * (2.0 * j + 1.0) / (2.0 * n)
    k = jnp.arange(bandwidth, dtype=jnp.float32)
    s = jnp.sum(jnp.sin((2.0 * k[None, :] + 1.0) * theta[:, None]) / (2.0 * k[None, :] + 1.0),
                axis=1)
    return (2.0 / n) * jnp.sin(theta) * s


if __name__ == "__main__":
    # small config consistent with the module: bandwidth L -> grid n = 2L
    bandwidth = 4
    n = 2 * bandwidth                 # 8
    M = 2 * bandwidth - 1             # 7  (m index dimension)
    in_channels = 4
    out_channels = 4
    batch = 2

    key = jax.random.PRNGKey(0)
    k_x, k_hr, k_hi, k_wr, k_wi, k_b = jax.random.split(key, 6)

    # input function on S2: (b, c, n, n) float32
    x = jax.random.normal(k_x, (batch, in_channels, n, n), dtype=jnp.float32)

    # parameters (deterministic)
    a = dh_aj(bandwidth)                                              # (n,)
    # TODO(synk): real spherical-harmonics basis values; synthetic random complex
    # basis used here (identical shapes / dtypes / reduction semantics).
    harm_r = jax.random.normal(k_hr, (bandwidth, M, n, n), dtype=jnp.float32) * 0.3
    harm_i = jax.random.normal(k_hi, (bandwidth, M, n, n), dtype=jnp.float32) * 0.3

    std = 1.0 / (np.pi * np.sqrt(bandwidth * in_channels))
    w_r = jax.random.normal(k_wr, (out_channels, in_channels, bandwidth), dtype=jnp.float32) * std
    w_i = jax.random.normal(k_wi, (out_channels, in_channels, bandwidth), dtype=jnp.float32) * std

    # mult[l] = 2*pi / sqrt(4*pi / l); PyTorch's expression gives mult[0] = 2*pi/inf = 0,
    # set explicitly instead of relying on IEEE inf propagation (DC term intentionally zeroed).
    l_idx = jnp.arange(bandwidth, dtype=jnp.float32)
    mult = jnp.where(l_idx > 0,
                     2.0 * jnp.pi / jnp.sqrt(4.0 * jnp.pi / jnp.maximum(l_idx, 1.0)),
                     0.0).astype(jnp.float32)

    # bias parameter (zeros at init in the module; nonzero here to exercise the add path)
    bias = jax.random.normal(k_b, (out_channels, 1, 1), dtype=jnp.float32) * 0.1

    params = prepare_spherical_conv_params(a, harm_r, harm_i, w_r, w_i, mult, bias)

    out = spherical_conv_pallas(x, params)
    out = jax.block_until_ready(out)

    ref = spherical_conv_ref(x, a, harm_r, harm_i, w_r, w_i, mult, bias)
    ref = jax.block_until_ready(ref)

    err = float(jnp.max(jnp.abs(out - ref)))
    assert out.shape == (batch, out_channels, n, n), out.shape
    assert err < 5e-2, f"max abs error too large: {err}"

    print("KERNEL_OK")
</pallas_src>

<mosaic_0001>
module attributes {stable_mosaic.version = 11 : i64} {
  func.func @spherical_conv_kernel(%arg0: i32, %arg1: memref<1x4x128xf32, #tpu.memory_space<vmem>>, %arg2: memref<128x256xbf16, #tpu.memory_space<vmem>>, %arg3: memref<256x128xbf16, #tpu.memory_space<vmem>>, %arg4: memref<4x4x128xf32, #tpu.memory_space<vmem>>, %arg5: memref<4x4x128xf32, #tpu.memory_space<vmem>>, %arg6: memref<4x1xf32, #tpu.memory_space<vmem>>, %arg7: memref<1x4x128xf32, #tpu.memory_space<vmem>>) attributes {dimension_semantics = [#tpu.dimension_semantics<parallel>], iteration_bounds = array<i64: 2>, scalar_prefetch = 0 : i64, scratch_operands = 0 : i64, tpu.core_type = #tpu.core_type<tc>, window_params = [{transform_indices = @transform_0, window_bounds = array<i64: 1, 4, 128>}, {pipeline_mode = #tpu.pipeline_mode<synchronous>, transform_indices = @transform_1, window_bounds = array<i64: 128, 256>}, {pipeline_mode = #tpu.pipeline_mode<synchronous>, transform_indices = @transform_2, window_bounds = array<i64: 256, 128>}, {pipeline_mode = #tpu.pipeline_mode<synchronous>, transform_indices = @transform_3, window_bounds = array<i64: 4, 4, 128>}, {pipeline_mode = #tpu.pipeline_mode<synchronous>, transform_indices = @transform_4, window_bounds = array<i64: 4, 4, 128>}, {pipeline_mode = #tpu.pipeline_mode<synchronous>, transform_indices = @transform_5, window_bounds = array<i64: 4, 1>}, {transform_indices = @transform_6, window_bounds = array<i64: 1, 4, 128>}]} {
    %c0 = arith.constant 0 : index
    %c0_0 = arith.constant 0 : index
    %c0_1 = arith.constant 0 : index
    %0 = vector.load %arg1[%c0, %c0_0, %c0_1] : memref<1x4x128xf32, #tpu.memory_space<vmem>>, vector<1x4x128xf32>
    %1 = vector.shape_cast %0 : vector<1x4x128xf32> to vector<4x128xf32>
    %2 = arith.truncf %1 : vector<4x128xf32> to vector<4x128xbf16>
    %c0_2 = arith.constant 0 : index
    %c0_3 = arith.constant 0 : index
    %3 = vector.load %arg2[%c0_2, %c0_3] : memref<128x256xbf16, #tpu.memory_space<vmem>>, vector<128x256xbf16>
    %cst = arith.constant dense<0.000000e+00> : vector<4x256xf32>
    %4 = tpu.matmul %2, %3, %cst {dimension_numbers = #tpu.dot_dimension_numbers<[1], [0], [0], [1], [0, 0, 1, 1], [], []>} : vector<4x128xbf16>, vector<128x256xbf16>, vector<4x256xf32> -> vector<4x256xf32>
    %5 = vector.shape_cast %4 : vector<4x256xf32> to vector<1x4x256xf32>
    %6 = vector.extract_strided_slice %5 {offsets = [0, 0, 0], sizes = [1, 4, 128], strides = [1, 1, 1]} : vector<1x4x256xf32> to vector<1x4x128xf32>
    %7 = vector.extract_strided_slice %5 {offsets = [0, 0, 128], sizes = [1, 4, 128], strides = [1, 1, 1]} : vector<1x4x256xf32> to vector<1x4x128xf32>
    %c0_4 = arith.constant 0 : index
    %c0_5 = arith.constant 0 : index
    %c0_6 = arith.constant 0 : index
    %8 = vector.load %arg4[%c0_4, %c0_5, %c0_6] : memref<4x4x128xf32, #tpu.memory_space<vmem>>, vector<4x4x128xf32>
    %c0_7 = arith.constant 0 : index
    %c0_8 = arith.constant 0 : index
    %c0_9 = arith.constant 0 : index
    %9 = vector.load %arg5[%c0_7, %c0_8, %c0_9] : memref<4x4x128xf32, #tpu.memory_space<vmem>>, vector<4x4x128xf32>
    %cst_10 = arith.constant 0.000000e+00 : f32
    %10 = vector.broadcast %cst_10 : f32 to vector<1x4x128xf32>
    %cst_11 = arith.constant 0.000000e+00 : f32
    %11 = vector.broadcast %cst_11 : f32 to vector<1x4x128xf32>
    %12 = vector.extract_strided_slice %6 {offsets = [0, 0, 0], sizes = [1, 1, 128], strides = [1, 1, 1]} : vector<1x4x128xf32> to vector<1x1x128xf32>
    %13 = vector.shape_cast %12 : vector<1x1x128xf32> to vector<1x128xf32>
    %14 = vector.shape_cast %13 : vector<1x128xf32> to vector<1x1x128xf32>
    %15 = vector.extract_strided_slice %7 {offsets = [0, 0, 0], sizes = [1, 1, 128], strides = [1, 1, 1]} : vector<1x4x128xf32> to vector<1x1x128xf32>
    %16 = vector.shape_cast %15 : vector<1x1x128xf32> to vector<1x128xf32>
    %17 = vector.shape_cast %16 : vector<1x128xf32> to vector<1x1x128xf32>
    %18 = vector.extract_strided_slice %8 {offsets = [0, 0, 0], sizes = [4, 1, 128], strides = [1, 1, 1]} : vector<4x4x128xf32> to vector<4x1x128xf32>
    %19 = vector.shape_cast %18 : vector<4x1x128xf32> to vector<4x128xf32>
    %20 = vector.shape_cast %19 : vector<4x128xf32> to vector<1x4x128xf32>
    %21 = vector.extract_strided_slice %9 {offsets = [0, 0, 0], sizes = [4, 1, 128], strides = [1, 1, 1]} : vector<4x4x128xf32> to vector<4x1x128xf32>
    %22 = vector.shape_cast %21 : vector<4x1x128xf32> to vector<4x128xf32>
    %23 = vector.shape_cast %22 : vector<4x128xf32> to vector<1x4x128xf32>
    %24 = vector.broadcast %14 : vector<1x1x128xf32> to vector<1x4x128xf32>
    %25 = arith.mulf %20, %24 : vector<1x4x128xf32>
    %26 = arith.addf %10, %25 : vector<1x4x128xf32>
    %27 = vector.broadcast %17 : vector<1x1x128xf32> to vector<1x4x128xf32>
    %28 = arith.mulf %23, %27 : vector<1x4x128xf32>
    %29 = arith.addf %26, %28 : vector<1x4x128xf32>
    %30 = vector.broadcast %14 : vector<1x1x128xf32> to vector<1x4x128xf32>
    %31 = arith.mulf %23, %30 : vector<1x4x128xf32>
    %32 = arith.addf %11, %31 : vector<1x4x128xf32>
    %33 = vector.broadcast %17 : vector<1x1x128xf32> to vector<1x4x128xf32>
    %34 = arith.mulf %20, %33 : vector<1x4x128xf32>
    %35 = arith.subf %32, %34 : vector<1x4x128xf32>
    %36 = vector.extract_strided_slice %6 {offsets = [0, 1, 0], sizes = [1, 1, 128], strides = [1, 1, 1]} : vector<1x4x128xf32> to vector<1x1x128xf32>
    %37 = vector.shape_cast %36 : vector<1x1x128xf32> to vector<1x128xf32>
    %38 = vector.shape_cast %37 : vector<1x128xf32> to vector<1x1x128xf32>
    %39 = vector.extract_strided_slice %7 {offsets = [0, 1, 0], sizes = [1, 1, 128], strides = [1, 1, 1]} : vector<1x4x128xf32> to vector<1x1x128xf32>
    %40 = vector.shape_cast %39 : vector<1x1x128xf32> to vector<1x128xf32>
    %41 = vector.shape_cast %40 : vector<1x128xf32> to vector<1x1x128xf32>
    %42 = vector.extract_strided_slice %8 {offsets = [0, 1, 0], sizes = [4, 1, 128], strides = [1, 1, 1]} : vector<4x4x128xf32> to vector<4x1x128xf32>
    %43 = vector.shape_cast %42 : vector<4x1x128xf32> to vector<4x128xf32>
    %44 = vector.shape_cast %43 : vector<4x128xf32> to vector<1x4x128xf32>
    %45 = vector.extract_strided_slice %9 {offsets = [0, 1, 0], sizes = [4, 1, 128], strides = [1, 1, 1]} : vector<4x4x128xf32> to vector<4x1x128xf32>
    %46 = vector.shape_cast %45 : vector<4x1x128xf32> to vector<4x128xf32>
    %47 = vector.shape_cast %46 : vector<4x128xf32> to vector<1x4x128xf32>
    %48 = vector.broadcast %38 : vector<1x1x128xf32> to vector<1x4x128xf32>
    %49 = arith.mulf %44, %48 : vector<1x4x128xf32>
    %50 = arith.addf %29, %49 : vector<1x4x128xf32>
    %51 = vector.broadcast %41 : vector<1x1x128xf32> to vector<1x4x128xf32>
    %52 = arith.mulf %47, %51 : vector<1x4x128xf32>
    %53 = arith.addf %50, %52 : vector<1x4x128xf32>
    %54 = vector.broadcast %38 : vector<1x1x128xf32> to vector<1x4x128xf32>
    %55 = arith.mulf %47, %54 : vector<1x4x128xf32>
    %56 = arith.addf %35, %55 : vector<1x4x128xf32>
    %57 = vector.broadcast %41 : vector<1x1x128xf32> to vector<1x4x128xf32>
    %58 = arith.mulf %44, %57 : vector<1x4x128xf32>
    %59 = arith.subf %56, %58 : vector<1x4x128xf32>
    %60 = vector.extract_strided_slice %6 {offsets = [0, 2, 0], sizes = [1, 1, 128], strides = [1, 1, 1]} : vector<1x4x128xf32> to vector<1x1x128xf32>
    %61 = vector.shape_cast %60 : vector<1x1x128xf32> to vector<1x128xf32>
    %62 = vector.shape_cast %61 : vector<1x128xf32> to vector<1x1x128xf32>
    %63 = vector.extract_strided_slice %7 {offsets = [0, 2, 0], sizes = [1, 1, 128], strides = [1, 1, 1]} : vector<1x4x128xf32> to vector<1x1x128xf32>
    %64 = vector.shape_cast %63 : vector<1x1x128xf32> to vector<1x128xf32>
    %65 = vector.shape_cast %64 : vector<1x128xf32> to vector<1x1x128xf32>
    %66 = vector.extract_strided_slice %8 {offsets = [0, 2, 0], sizes = [4, 1, 128], strides = [1, 1, 1]} : vector<4x4x128xf32> to vector<4x1x128xf32>
    %67 = vector.shape_cast %66 : vector<4x1x128xf32> to vector<4x128xf32>
    %68 = vector.shape_cast %67 : vector<4x128xf32> to vector<1x4x128xf32>
    %69 = vector.extract_strided_slice %9 {offsets = [0, 2, 0], sizes = [4, 1, 128], strides = [1, 1, 1]} : vector<4x4x128xf32> to vector<4x1x128xf32>
    %70 = vector.shape_cast %69 : vector<4x1x128xf32> to vector<4x128xf32>
    %71 = vector.shape_cast %70 : vector<4x128xf32> to vector<1x4x128xf32>
    %72 = vector.broadcast %62 : vector<1x1x128xf32> to vector<1x4x128xf32>
    %73 = arith.mulf %68, %72 : vector<1x4x128xf32>
    %74 = arith.addf %53, %73 : vector<1x4x128xf32>
    %75 = vector.broadcast %65 : vector<1x1x128xf32> to vector<1x4x128xf32>
    %76 = arith.mulf %71, %75 : vector<1x4x128xf32>
    %77 = arith.addf %74, %76 : vector<1x4x128xf32>
    %78 = vector.broadcast %62 : vector<1x1x128xf32> to vector<1x4x128xf32>
    %79 = arith.mulf %71, %78 : vector<1x4x128xf32>
    %80 = arith.addf %59, %79 : vector<1x4x128xf32>
    %81 = vector.broadcast %65 : vector<1x1x128xf32> to vector<1x4x128xf32>
    %82 = arith.mulf %68, %81 : vector<1x4x128xf32>
    %83 = arith.subf %80, %82 : vector<1x4x128xf32>
    %84 = vector.extract_strided_slice %6 {offsets = [0, 3, 0], sizes = [1, 1, 128], strides = [1, 1, 1]} : vector<1x4x128xf32> to vector<1x1x128xf32>
    %85 = vector.shape_cast %84 : vector<1x1x128xf32> to vector<1x128xf32>
    %86 = vector.shape_cast %85 : vector<1x128xf32> to vector<1x1x128xf32>
    %87 = vector.extract_strided_slice %7 {offsets = [0, 3, 0], sizes = [1, 1, 128], strides = [1, 1, 1]} : vector<1x4x128xf32> to vector<1x1x128xf32>
    %88 = vector.shape_cast %87 : vector<1x1x128xf32> to vector<1x128xf32>
    %89 = vector.shape_cast %88 : vector<1x128xf32> to vector<1x1x128xf32>
    %90 = vector.extract_strided_slice %8 {offsets = [0, 3, 0], sizes = [4, 1, 128], strides = [1, 1, 1]} : vector<4x4x128xf32> to vector<4x1x128xf32>
    %91 = vector.shape_cast %90 : vector<4x1x128xf32> to vector<4x128xf32>
    %92 = vector.shape_cast %91 : vector<4x128xf32> to vector<1x4x128xf32>
    %93 = vector.extract_strided_slice %9 {offsets = [0, 3, 0], sizes = [4, 1, 128], strides = [1, 1, 1]} : vector<4x4x128xf32> to vector<4x1x128xf32>
    %94 = vector.shape_cast %93 : vector<4x1x128xf32> to vector<4x128xf32>
    %95 = vector.shape_cast %94 : vector<4x128xf32> to vector<1x4x128xf32>
    %96 = vector.broadcast %86 : vector<1x1x128xf32> to vector<1x4x128xf32>
    %97 = arith.mulf %92, %96 : vector<1x4x128xf32>
    %98 = arith.addf %77, %97 : vector<1x4x128xf32>
    %99 = vector.broadcast %89 : vector<1x1x128xf32> to vector<1x4x128xf32>
    %100 = arith.mulf %95, %99 : vector<1x4x128xf32>
    %101 = arith.addf %98, %100 : vector<1x4x128xf32>
    %102 = vector.broadcast %86 : vector<1x1x128xf32> to vector<1x4x128xf32>
    %103 = arith.mulf %95, %102 : vector<1x4x128xf32>
    %104 = arith.addf %83, %103 : vector<1x4x128xf32>
    %105 = vector.broadcast %89 : vector<1x1x128xf32> to vector<1x4x128xf32>
    %106 = arith.mulf %92, %105 : vector<1x4x128xf32>
    %107 = arith.subf %104, %106 : vector<1x4x128xf32>
    %108 = tpu.concatenate %101, %107 in 2 : vector<1x4x128xf32>, vector<1x4x128xf32> -> vector<1x4x256xf32>
    %109 = vector.shape_cast %108 : vector<1x4x256xf32> to vector<4x256xf32>
    %110 = arith.truncf %109 : vector<4x256xf32> to vector<4x256xbf16>
    %c0_12 = arith.constant 0 : index
    %c0_13 = arith.constant 0 : index
    %111 = vector.load %arg3[%c0_12, %c0_13] : memref<256x128xbf16, #tpu.memory_space<vmem>>, vector<256x128xbf16>
    %cst_14 = arith.constant dense<0.000000e+00> : vector<4x128xf32>
    %112 = tpu.matmul %110, %111, %cst_14 {dimension_numbers = #tpu.dot_dimension_numbers<[1], [0], [0], [1], [0, 0, 1, 1], [], []>} : vector<4x256xbf16>, vector<256x128xbf16>, vector<4x128xf32> -> vector<4x128xf32>
    %113 = vector.shape_cast %112 : vector<4x128xf32> to vector<1x4x128xf32>
    %c0_15 = arith.constant 0 : index
    %c0_16 = arith.constant 0 : index
    %114 = vector.load %arg6[%c0_15, %c0_16] : memref<4x1xf32, #tpu.memory_space<vmem>>, vector<4x1xf32>
    %115 = vector.shape_cast %114 : vector<4x1xf32> to vector<1x4x1xf32>
    %116 = vector.broadcast %115 : vector<1x4x1xf32> to vector<1x4x128xf32>
    %117 = arith.addf %113, %116 : vector<1x4x128xf32>
    %c0_17 = arith.constant 0 : index
    %c0_18 = arith.constant 0 : index
    %c0_19 = arith.constant 0 : index
    %118 = vector.load %arg7[%c0_17, %c0_18, %c0_19] : memref<1x4x128xf32, #tpu.memory_space<vmem>>, vector<1x4x128xf32>
    tpu.vector_store %arg7[%c0_17, %c0_18, %c0_19], %117 {strides = array<i32>} : memref<1x4x128xf32, #tpu.memory_space<vmem>>, vector<1x4x128xf32>,
    return
  }
  func.func @transform_0(%arg0: i32) -> (i32, i32, i32) {
    %c0_i32 = arith.constant 0 : i32
    %c0_i32_0 = arith.constant 0 : i32
    %c0_i32_1 = arith.constant 0 : i32
    return %arg0, %c0_i32, %c0_i32_0 : i32, i32, i32
  }
  func.func @transform_1(%arg0: i32) -> (i32, i32) {
    %c0_i32 = arith.constant 0 : i32
    %c0_i32_0 = arith.constant 0 : i32
    %c0_i32_1 = arith.constant 0 : i32
    return %c0_i32, %c0_i32_0 : i32, i32
  }
  func.func @transform_2(%arg0: i32) -> (i32, i32) {
    %c0_i32 = arith.constant 0 : i32
    %c0_i32_0 = arith.constant 0 : i32
    %c0_i32_1 = arith.constant 0 : i32
    return %c0_i32, %c0_i32_0 : i32, i32
  }
  func.func @transform_3(%arg0: i32) -> (i32, i32, i32) {
    %c0_i32 = arith.constant 0 : i32
    %c0_i32_0 = arith.constant 0 : i32
    %c0_i32_1 = arith.constant 0 : i32
    %c0_i32_2 = arith.constant 0 : i32
    return %c0_i32, %c0_i32_0, %c0_i32_1 : i32, i32, i32
  }
  func.func @transform_4(%arg0: i32) -> (i32, i32, i32) {
    %c0_i32 = arith.constant 0 : i32
    %c0_i32_0 = arith.constant 0 : i32
    %c0_i32_1 = arith.constant 0 : i32
    %c0_i32_2 = arith.constant 0 : i32
    return %c0_i32, %c0_i32_0, %c0_i32_1 : i32, i32, i32
  }
  func.func @transform_5(%arg0: i32) -> (i32, i32) {
    %c0_i32 = arith.constant 0 : i32
    %c0_i32_0 = arith.constant 0 : i32
    %c0_i32_1 = arith.constant 0 : i32
    return %c0_i32, %c0_i32_0 : i32, i32
  }
  func.func @transform_6(%arg0: i32) -> (i32, i32, i32) {
    %c0_i32 = arith.constant 0 : i32
    %c0_i32_0 = arith.constant 0 : i32
    %c0_i32_1 = arith.constant 0 : i32
    return %arg0, %c0_i32, %c0_i32_0 : i32, i32, i32
  }
}

</mosaic_0001>

<bundles_post_ra>
// kernel: tpu_custom_call.1
= control target key start
LH: loop header
LB: loop body
LE: loop exit
PB: predicated region body
PF: predicated region fallthrough
CT: control target
= control target key end

     0   :  { %s1942_s0 = inlined_call_operand.hbm [shape: f32[2,4,128], index: 0, kind: input, shape index: {}]   ;;  %s1943_s1 = inlined_call_operand.hbm [shape: bf16[128,256], index: 1, kind: input, shape index: {}]   ;;  %s1944_s2 = inlined_call_operand.hbm [shape: bf16[256,128], index: 2, kind: input, shape index: {}]   ;;  %s1945_s3 = inlined_call_operand.hbm [shape: f32[4,4,128], index: 3, kind: input, shape index: {}]   ;;  %s1946_s4 = inlined_call_operand.hbm [shape: f32[4,4,128], index: 4, kind: input, shape index: {}]   ;;  %s1947_s5 = inlined_call_operand.vmem [shape: f32[4,1], index: 5, kind: input, shape index: {}]   ;;  %s1948_s6 = inlined_call_operand.hbm [shape: f32[2,4,128], index: 6, kind: output, shape index: {}]  }
   0x1   :  { %1953 = sst [smem:[#allocation16_spill]] %s1943_s1 }
   0x2   :  { %11 = vsyncpa [#allocation3], 0 }
   0x3   :  { %13 = vsyncpa [#allocation3 + $0x1], 0 }
   0x4   :  { %14 = vsyncpa [#allocation6], 0 }
   0x5   :  { %15 = vsyncpa [#allocation9], 0 }
   0x6   :  { %16 = vsyncpa [#allocation4], 0 }
   0x7   :  { %18 = vsyncpa [#allocation4 + $0x1], 0  ;;  %s1561_s21 = smov 0   ;;  %s1563_s22 = smov 0  }
   0x8   :  { %s1565_s23 = smov 0   ;;  %s1567_s24 = smov 0  }
   0x9 LB: > { %s1515_s25 = smov [#allocation5]   ;;  %s1582_s27 = sadd.s32 4294967295, %s1513_s24   ;;  %s1513_s24 = sphi %s1567_s24, %s1974_s24   ;;  %s1509_s23 = sphi %s1565_s23, %s1973_s23   ;;  %s1505_s22 = sphi %s1563_s22, %s1972_s22   ;;  %s1501_s21 = sphi %s1561_s21, %s1971_s21  }
   0xa   : > { %s198_s26 = sshll.u32 %s1515_s25, 4  ;;  %p1103_p0 = scmp.ge.s32.totalorder %s1513_s24, 1  ;;  %s199_s26 = int_to_ptr.vmem [resolvable:$true] %s198_s26 }
   0xb   : > { %p1949_p1 = scmp.eq.s32.totalorder %s1582_s27, 0  ;;  %p186_p2 = scmp.lt.s32.totalorder %s1513_s24, 3 }
   0xc   : > { %s1516_s30 = smov [#allocation8]   ;;  %s1517_s8 = smov [#allocation7]  }
   0xd   : > { %p1587_p3 = pnand %p1103_p0, %p186_p2  ;;  %s224_s7 = sshll.u32 %s1516_s30, 4  ;;  %s1600_s7 = int_to_ptr.vmem [resolvable:$true] %s224_s7 }
   0xe   : > { %s1602_s9 = sshll.u32 %s1517_s8, 4  ;;  %s1320_s10 = scalar_lea.vmem %s199_s26, 2048  ;;  %s212_s9 = int_to_ptr.vmem [resolvable:$true] %s1602_s9 }
   0xf   : > { %s1954_s28 = scalar_select %p1587_p3, 1, 0 }
  0x10   : > { %p1196_p5 = pneg %p1587_p3  ;;  %p1321_p8 = scmp.ne.s32.totalorder %s199_s26, %s1320_s10 }
  0x11   : > { %p1328_p11 = scmp.lt.s32.totalorder %s199_s26, %s199_s26  ;;  %p1329_p12 = scmp.lt.s32.totalorder %s1320_s10, %s1320_s10 }
  0x12   : > { %p1596_p6 = pnand %p1196_p5, %p1949_p1 }
  0x13   : > { %p1330_p13 = por %p1329_p12, %p1328_p11 }
  0x14   : > { %p1311_p7 = pneg %p1596_p6 }
  0x16   : > { %p1323_p9 = pnand %p1321_p8, %p1311_p7 }
  0x18   : > { %p1324_p10 = pneg %p1323_p9 }
  0x1a   : > { %p1331_p0 = pnand %p1330_p13, %p1324_p10 }
  0x1c   : > { %1334 = shalt.err (!%p1331_p0)
}
  0x1d   : > { %s1518_s11 = smov 128   ;;  %s1519_s12 = smov 8  }
  0x1e   : > { %s1956_s1 = sld [smem:[#allocation16_spill]]  ;;  %s1346_s15 = scalar_lea.vmem %s1600_s7, 256 }
  0x1f   : > { %p1347_p2 = scmp.ne.s32.totalorder %s1600_s7, %s1346_s15  ;;  %p1354_p9 = scmp.lt.s32.totalorder %s1600_s7, %s1600_s7 }
  0x20   : > { %p1355_p10 = scmp.lt.s32.totalorder %s1346_s15, %s1346_s15 }
  0x21   : > { %p1349_p5 = pnand %p1347_p2, %p1311_p7 }
  0x22   : > { %p1356_p11 = por %p1355_p10, %p1354_p9 }
  0x23   : > { %p1350_p8 = pneg %p1349_p5 }
  0x24   : > { %1199 = dma.hbm_to_vmem [thread:$0]  (!%p1596_p6), %s1956_s1, 2048, %s199_s26, [#allocation6], %s1518_s11, %s1518_s11, %s1519_s12  }
  0x25   : > { %p1357_p12 = pnand %p1356_p11, %p1350_p8 }
  0x27   : > { %1360 = shalt.err (!%p1357_p12)
}
  0x28   : > { %s1520_s16 = smov 64   ;;  %s1521_s17 = smov 4  }
  0x29   : > { %1205 = dma.hbm_to_vmem [thread:$0]  (!%p1596_p6), %s1945_s3, 256, %s1600_s7, [#allocation9], %s1520_s16, %s1520_s16, %s1521_s17  }
  0x2a   : > { %s1372_s20 = scalar_lea.vmem %s212_s9, 2048  ;;  %p1380_p5 = scmp.lt.s32.totalorder %s212_s9, %s212_s9 }
  0x2b   : > { %p1373_p13 = scmp.ne.s32.totalorder %s212_s9, %s1372_s20  ;;  %p1381_p8 = scmp.lt.s32.totalorder %s1372_s20, %s1372_s20 }
  0x2d   : > { %p1375_p0 = pnand %p1373_p13, %p1311_p7  ;;  %p1382_p9 = por %p1381_p8, %p1380_p5 }
  0x2f   : > { %p1376_p2 = pneg %p1375_p0 }
  0x31   : > { %p1383_p10 = pnand %p1382_p9, %p1376_p2 }
  0x33   : > { %1386 = shalt.err (!%p1383_p10)
}
  0x34   : > { %1202 = dma.hbm_to_vmem [thread:$0]  (!%p1596_p6), %s1944_s2, 2048, %s212_s9, [#allocation6], %s1520_s16, %s1520_s16, %s1521_s17  }
  0x35   : > { %s1522_s30 = smov [#allocation10]  }
  0x36   : > { %s237_s7 = sshll.u32 %s1522_s30, 4  ;;  %s238_s7 = int_to_ptr.vmem [resolvable:$true] %s237_s7 }
  0x37   : > { %s1398_s8 = scalar_lea.vmem %s238_s7, 256  ;;  %p1406_p0 = scmp.lt.s32.totalorder %s238_s7, %s238_s7 }
  0x38   : > { %p1399_p11 = scmp.ne.s32.totalorder %s238_s7, %s1398_s8  ;;  %p1407_p5 = scmp.lt.s32.totalorder %s1398_s8, %s1398_s8 }
  0x3a   : > { %p1401_p12 = pnand %p1399_p11, %p1311_p7  ;;  %p1408_p2 = por %p1407_p5, %p1406_p0 }
  0x3c   : > { %p1402_p13 = pneg %p1401_p12 }
  0x3e   : > { %p1409_p8 = pnand %p1408_p2, %p1402_p13 }
  0x40   : > { %1412 = shalt.err (!%p1409_p8)
}
  0x41   : > { %1208 = dma.hbm_to_vmem [thread:$0]  (!%p1596_p6), %s1946_s4, 256, %s238_s7, [#allocation9], %s1520_s16, %s1520_s16, %s1521_s17  }
  0x42   : > { %s1102_s9 = sadd.s32 4294967294, %s1513_s24   ;;  %s1646_s29 = sadd.s32 1, %s1513_s24  }
  0x43   : > { %s28_s12 = ssub.s32 %s1513_s24, %s1646_s29  ;;  %s31_s13 = sadd.s32 1, %s1509_s23 }
  0x44   : > { %p29_p7 = scmp.eq.s32.totalorder %s28_s12, 0  ;;  %p38_p9 = scmp.ne.s32.totalorder %s1509_s23, %s1505_s22 }
  0x45   : > { %p39_p10 = scmp.eq.s32.totalorder %s1513_s24, 0  ;;  %p44_p11 = scmp.ne.s32.totalorder %s1505_s22, %s1501_s21 }
  0x46   : > { %s1657_s14 = scalar_select %p29_p7, %s1509_s23, %s31_s13  }
  0x47   : > { %p1659_p12 = por %p39_p10, %p38_p9  ;;  %p1665_p6 = por %p1949_p1, %p44_p11 }
  0x48   : > { %p173_p13 = scmp.eq.s32.totalorder %s1582_s27, 1  ;;  %p179_p0 = scmp.eq.s32.totalorder %s1102_s9, 1 }
  0x49   : > { %s1958_s16 = scalar_select %p1665_p6, 1, 0 }
  0x4a   : > { %p1221_p5 = scmp.lt.s32.totalorder %s1513_s24, 2  ;;  %s254_s17 = sand.u32 1, %s1509_s23  }
  0x4b   : > { %p1672_p2 = por %p173_p13, %p38_p9  ;;  %p1676_p8 = por %p179_p0, %p44_p11 }
  0x4c   : > { %s1109_s20 = sshll.u32 %s254_s17, 2  ;;  %s1110_s25 = sshll.u32 %s1513_s24, 6 }
  0x4d   : > { %s1959_s18 = scalar_select %p1672_p2, 1, 0 }
  0x4e   : > { %s1960_s19 = scalar_select %p1676_p8, 1, 0 }
  0x4f   : > { %s1684_s7 = scalar_lea.hbm %s1942_s0, %s1110_s25  ;;  %s258_s8 = scalar_lea.vmem [#allocation2], %s1109_s20 }
  0x50   : > { %s265_s10 = sshll.u32 %s258_s8, 4  ;;  %p1688_p7 = pnand %p1221_p5, %p1659_p12  ;;  %s266_s10 = int_to_ptr.vmem [resolvable:$true] %s265_s10 }
  0x51   : > { %s255_s9 = scalar_lea.sflag [#allocation3], %s254_s17  ;;  %s1413_s12 = scalar_lea.hbm %s1684_s7, 64 }
  0x52   : > { %p1414_p9 = scmp.ne.s32.totalorder %s1684_s7, %s1413_s12  ;;  %p1415_p10 = pneg %p1688_p7 }
  0x53   : > { %s1418_s26 = scalar_lea.hbm %s1942_s0, 128  ;;  %p1419_p0 = scmp.lt.s32.totalorder %s1684_s7, %s1942_s0 }
  0x54   : > { %p1416_p11 = pnand %p1415_p10, %p1414_p9  ;;  %p1420_p12 = scmp.lt.s32.totalorder %s1418_s26, %s1413_s12 }
  0x56   : > { %p1417_p13 = pneg %p1416_p11  ;;  %p1421_p5 = por %p1420_p12, %p1419_p0 }
  0x58   : > { %p1422_p4 = pnand %p1421_p5, %p1417_p13 }
  0x5a   : > { %1425 = shalt.err (!%p1422_p4)
}
  0x5b   : > { %s1426_s15 = scalar_lea.vmem %s266_s10, 64  ;;  %s1523_s17 = smov [#allocation2]  }
  0x5c   : > { %p1427_p1 = scmp.ne.s32.totalorder %s266_s10, %s1426_s15  ;;  %s1431_s8 = sshll.u32 %s1523_s17, 4  ;;  %s1432_s8 = int_to_ptr.vmem [resolvable:$false] %s1431_s8 }
  0x5d   : > { %s1433_s1 = scalar_lea.vmem %s1432_s8, 128  ;;  %p1434_p9 = scmp.lt.s32.totalorder %s266_s10, %s1432_s8 }
  0x5e   : > { %p1429_p8 = pnand %p1427_p1, %p1415_p10  ;;  %p1435_p11 = scmp.lt.s32.totalorder %s1433_s1, %s1426_s15 }
  0x60   : > { %p1430_p2 = pneg %p1429_p8  ;;  %p1436_p6 = por %p1435_p11, %p1434_p9 }
  0x62   : > { %p1437_p3 = pnand %p1436_p6, %p1430_p2 }
  0x64   : > { %1440 = shalt.err (!%p1437_p3)
}
  0x65   : > { %1212 = dma.hbm_to_vmem [thread:$0]  (!%p1688_p7), %s1684_s7, 64, %s266_s10, %s255_s9  }
  0x66   : > { %p1962_p13 = scmp.ne.s32.totalorder %s1954_s28, 0 }
  0x67   : > { %s1709_s12 = sand.u32 (!%p1962_p13), 1, %s1505_s22   ;;  %p1963_p1 = scmp.ne.s32.totalorder (!%p1962_p13), %s1958_s16, 0 }
  0x68   : > { %274 = sbr.rel (%p1962_p13) target bundleno = 611 (0x263), region = 44  ;;  %s1112_s13 = sshll.u32 (!%p1962_p13), %s1709_s12, 2 }
  0x69   : > { %s277_s25 = scalar_lea.sflag (!%p1962_p13), [#allocation3], %s1709_s12  ;;  %s1715_s1 = scalar_lea.vmem (!%p1962_p13), [#allocation2], %s1112_s13 }
  0x6d   : > { %1484 = dma.done.wait (%p1963_p1), %s277_s25, 64  }
  0x6e   : > { %1486 = vsyncadd (%p1963_p1), %s277_s25, 4294967232  ;;  %p1964_p3 = scmp.eq.s32.totalorder %s1582_s27, 0 }
  0x70   : > { %1488 = dma.done.wait (%p1964_p3), [#allocation6], 4096   ;;  %p1965_p4 = pmov %p1964_p3 }
  0x71   : > { %p1966_p6 = pmov %p1964_p3 }
  0x72   : > { %1490 = vsyncadd (%p1965_p4), [#allocation6], 4294963200 }
  0x73   : > { %1492 = dma.done.wait (%p1966_p6), [#allocation9], 512   ;;  %p1967_p2 = pmov %p1964_p3 }
  0x74   : > { %v1524_v0 = vmov 0   ;;  %v1269_v1 = vld [vmem:[#allocation5 + $0x74] ss:$8 sps:$4 sm:$0xff]   ;;  %v1271_v2 = vld [vmem:[#allocation5 + $0x70] ss:$8 sps:$4 sm:$0xff]   ;;  %v1297_v23 = vld [vmem:[#allocation7 + $0x68] sm:$0xff]   ;;  %v473_v36 = vlaneseq }
  0x75   : > { %1494 = vsyncadd (%p1967_p2), [#allocation9], 4294966784  ;;  %456 = vmatprep.mubr.bf16.mxu0 %v1524_v0  ;;  %1268 = vset.pattern.permute.xlu0 %v1524_v0  ;;  %v1272_v3 = vld [vmem:[#allocation5 + $0x64] ss:$8 sps:$4 sm:$0xff]   ;;  %v1274_v4 = vld [vmem:[#allocation5 + $0x60] ss:$8 sps:$4 sm:$0xff]  }
  0x76   : > { %424 = vmatprep.subr.bf16.mxu0 %v1269_v1  ;;  %v1275_v5 = vld [vmem:[#allocation5 + $0x54] ss:$8 sps:$4 sm:$0xff]   ;;  %v1277_v6 = vld [vmem:[#allocation5 + $0x50] ss:$8 sps:$4 sm:$0xff]   ;;  %v1278_v7 = vld [vmem:[#allocation5 + $0x44] ss:$8 sps:$4 sm:$0xff]  }
  0x77   : > { %425 = vmatpush1.bf16.msra.mxu0 %v1271_v2  ;;  %v1280_v8 = vld [vmem:[#allocation5 + $0x40] ss:$8 sps:$4 sm:$0xff]   ;;  %v1281_v9 = vld [vmem:[#allocation5 + $0x34] ss:$8 sps:$4 sm:$0xff]   ;;  %v1283_v12 = vld [vmem:[#allocation5 + $0x30] ss:$8 sps:$4 sm:$0xff]  }
  0x78   : > { %426 = vmatprep.subr.bf16.mxu0 %v1272_v3  ;;  %v1293_v10 = vld [vmem:[#allocation7 + $0x78] sm:$0xff]   ;;  %v1284_v13 = vld [vmem:[#allocation5 + $0x24] ss:$8 sps:$4 sm:$0xff]   ;;  %v1286_v14 = vld [vmem:[#allocation5 + $0x20] ss:$8 sps:$4 sm:$0xff]   ;;  %v474_v37 = vshrl.u32 %v473_v36, 7 }
  0x79   : > { %v1294_v11 = vld [vmem:[#allocation7 + $0x38] sm:$0xff]   ;;  %1154 = vmatprep.subr.bf16.mxu1 %v1293_v10  ;;  %v1290_v17 = vld [vmem:[#allocation5 + $0x4] ss:$8 sps:$4 sm:$0xff]   ;;  %v1292_v18 = vld [vmem:[#allocation5] ss:$8 sps:$4 sm:$0xff]   ;;  %vm782_vm0 = vcmask 1041409  }
  0x7a   : > { %1155 = vmatpush3.bf16.msra.mxu1 %v1294_v11  ;;  %v1287_v15 = vld [vmem:[#allocation5 + $0x14] ss:$8 sps:$4 sm:$0xff]   ;;  %v1289_v16 = vld [vmem:[#allocation5 + $0x10] ss:$8 sps:$4 sm:$0xff]   ;;  %v1298_v24 = vld [vmem:[#allocation7 + $0x28] sm:$0xff]   ;;  %v475_v38 = vsub.s32 0, %v474_v37 }
  0x7b   : > { %427 = vmatpush1.bf16.msra.mxu0 %v1274_v4  ;;  %v326_v19 = vld [vmem:[%s1715_s1] sm:$0xf]  ;;  %v1295_v21 = vld [vmem:[#allocation7 + $0x70] sm:$0xff]   ;;  %v1299_v25 = vld [vmem:[#allocation7 + $0x60] sm:$0xff]   ;;  %v515_v39 = vsub.s32 1, %v474_v37  ;;  %v603_v40 = vsub.s32 2, %v474_v37 }
  0x7c   : > { %428 = vmatprep.subr.bf16.mxu0 %v1275_v5  ;;  %v327_v20 = vpack.c.bf16 %v326_v19, %v326_v19  ;;  %v1296_v22 = vld [vmem:[#allocation7 + $0x30] sm:$0xff]   ;;  %1156 = vmatprep.subr.bf16.mxu1 %v1295_v21  ;;  %v1300_v26 = vld [vmem:[#allocation7 + $0x20] sm:$0xff]   ;;  %v1301_v27 = vld [vmem:[#allocation7 + $0x58] sm:$0xff]   ;;  %v691_v41 = vsub.s32 3, %v474_v37  ;;  %vm785_vm1 = vcmask 1042434   ;;  %vm788_vm2 = vcmask 1043459  }
  0x7d   : > { %v1302_v28 = vld [vmem:[#allocation7 + $0x18] sm:$0xff]   ;;  %v1303_v29 = vld [vmem:[#allocation7 + $0x50] sm:$0xff]   ;;  %v1305_v31 = vld [vmem:[#allocation7 + $0x48] sm:$0xff]   ;;  %s1151_s7 = sshll.u32 %s1582_s27, 6  ;;  %s324_s10 = scalar_lea.vmem [#allocation11], %s1112_s13 }
  0x7e   : > { %1157 = vmatpush3.bf16.msra.mxu1 %v1296_v22  ;;  %v1304_v30 = vld [vmem:[#allocation7 + $0x10] sm:$0xff]   ;;  %v1306_v32 = vld [vmem:[#allocation7 + $0x8] sm:$0xff]   ;;  %v1307_v33 = vld [vmem:[#allocation7 + $0x40] sm:$0xff]   ;;  %s994_s11 = sshll.u32 %s324_s10, 4  ;;  %s1905_s20 = scalar_lea.hbm %s1948_s6, %s1151_s7  ;;  %s995_s11 = int_to_ptr.vmem [resolvable:$true] %s994_s11 }
  0x7f   : > { %429 = vmatpush1.bf16.msra.mxu0 %v1277_v6  ;;  %1158 = vmatprep.subr.bf16.mxu1 %v1297_v23  ;;  %v1308_v34 = vld [vmem:[#allocation7] sm:$0xff]   ;;  %v972_v35 = vld [vmem:[%s1947_s5] sm:$0xf]  ;;  %v1733_v43 = vld [vmem:[#allocation10] sm:$0xf]  ;;  %s981_s30 = scalar_lea.sflag [#allocation4], %s1709_s12 }
  0x80   : > { %430 = vmatprep.subr.bf16.mxu0 %v1278_v7  ;;  %975 = vperm.xlu0 %1268, %v972_v35   ;;  %v1737_v45 = vld [vmem:[#allocation10 + $0x4] sm:$0xf]  ;;  %v1739_v46 = vld [vmem:[#allocation10 + $0x8] sm:$0xf]  ;;  %v1741_v47 = vld [vmem:[#allocation10 + $0xc] sm:$0xf] }
  0x81   : > { %v1757_v56 = vld [vmem:[#allocation8] sm:$0xf]  ;;  %v1759_v58 = vld [vmem:[#allocation8 + $0x4] sm:$0xf]  ;;  %v1761_v59 = vld [vmem:[#allocation8 + $0x8] sm:$0xf] }
  0x82   : > { %1159 = vmatpush3.bf16.msra.mxu1 %v1298_v24  ;;  %v1763_v60 = vld [vmem:[#allocation8 + $0xc] sm:$0xf]  ;;  %s1441_s15 = scalar_lea.vmem %s995_s11, 64  ;;  %p1968_p7 = scmp.ne.s32.totalorder %s1959_s18, 0 }
  0x83   : > { %431 = vmatpush1.bf16.msra.mxu0 %v1280_v8  ;;  %1160 = vmatprep.subr.bf16.mxu1 %v1299_v25  ;;  %p1442_p8 = scmp.ne.s32.totalorder %s995_s11, %s1441_s15  ;;  %s1525_s27 = smov [#allocation11]  }
  0x84   : > { %432 = vmatprep.subr.bf16.mxu0 %v1281_v9  ;;  %s1445_s17 = sshll.u32 %s1525_s27, 4  ;;  %s1446_s17 = int_to_ptr.vmem [resolvable:$false] %s1445_s17 }
  0x85   : > { %p1443_p10 = pnand %p1442_p8, %p1968_p7  ;;  %s1447_s8 = scalar_lea.vmem %s1446_s17, 128 }
  0x86   : > { %1161 = vmatpush3.bf16.msra.mxu1 %v1300_v26  ;;  %p1448_p12 = scmp.lt.s32.totalorder %s995_s11, %s1446_s17  ;;  %p1449_p5 = scmp.lt.s32.totalorder %s1447_s8, %s1441_s15 }
  0x87   : > { %433 = vmatpush1.bf16.msra.mxu0 %v1283_v12  ;;  %1162 = vmatprep.subr.bf16.mxu1 %v1301_v27  ;;  %p1444_p0 = pneg %p1443_p10 }
  0x88   : > { %434 = vmatprep.subr.bf16.mxu0 %v1284_v13  ;;  %p1450_p9 = por %p1449_p5, %p1448_p12 }
  0x8a   : > { %1163 = vmatpush3.bf16.msra.mxu1 %v1302_v28  ;;  %p1451_p11 = pnand %p1450_p9, %p1444_p0 }
  0x8b   : > { %435 = vmatpush1.bf16.msra.mxu0 %v1286_v14  ;;  %1164 = vmatprep.subr.bf16.mxu1 %v1303_v29 }
  0x8c   : > { %436 = vmatprep.subr.bf16.mxu0 %v1287_v15 }
  0x8e   : > { %1165 = vmatpush3.bf16.msra.mxu1 %v1304_v30 }
  0x8f   : > { %437 = vmatpush1.bf16.msra.mxu0 %v1289_v16  ;;  %1166 = vmatprep.subr.bf16.mxu1 %v1305_v31 }
  0x90   : > { %438 = vmatprep.subr.bf16.mxu0 %v1290_v17 }
  0x92   : > { %1167 = vmatpush3.bf16.msra.mxu1 %v1306_v32 }
  0x93   : > { %439 = vmatpush1.bf16.msra.mxu0 %v1292_v18  ;;  %1168 = vmatprep.subr.bf16.mxu1 %v1307_v33 }
  0x96   : > { %457 = vmatmul.mubr.bf16.vlgmr.msra.gmra.mxu0 %v327_v20  ;;  %1169 = vmatpush3.bf16.msra.mxu1 %v1308_v34 }
 0x156   : > { %v458_v42 = vpop.f32.mrf.mxu0 }
 0x157   : > { %v1735_v44 = vrot.slane %v458_v42, %v475_v38  ;;  %v1743_v48 = vrot.slane %v458_v42, %v515_v39  ;;  %v1745_v49 = vrot.slane %v458_v42, %v603_v40  ;;  %v1747_v50 = vrot.slane %v458_v42, %v691_v41 }
 0x158   : > { %v460_v51 = vpop.f32.mrf.mxu0 }
 0x159   : > { %v1749_v52 = vrot.slane %v460_v51, %v475_v38  ;;  %v1751_v53 = vrot.slane %v460_v51, %v515_v39  ;;  %v1753_v54 = vrot.slane %v460_v51, %v603_v40  ;;  %v1755_v55 = vrot.slane %v460_v51, %v691_v41 }
 0x15a   : > { %v462_v57 = vpop.f32.mrf.mxu0  ;;  %v497_v61 = vmul.f32 %v1735_v44, %v1733_v43  ;;  %v498_v62 = vmul.f32 %v1735_v44, %v1737_v45  ;;  %v499_v63 = vmul.f32 %v1735_v44, %v1739_v46  ;;  %v500_v0 = vmul.f32 %v1735_v44, %v1741_v47 }
 0x15b   : > { %v505_v1 = vmul.f32 %v1749_v52, %v1757_v56  ;;  %v506_v2 = vmul.f32 %v1749_v52, %v1759_v58  ;;  %v507_v3 = vmul.f32 %v1749_v52, %v1761_v59  ;;  %v508_v4 = vmul.f32 %v1749_v52, %v1763_v60 }
 0x15c   : > { %v463_v5 = vpop.f32.mrf.mxu0  ;;  %v561_v6 = vmul.f32 %v1743_v48, %v1733_v43  ;;  %v562_v7 = vmul.f32 %v1743_v48, %v1737_v45  ;;  %v563_v8 = vmul.f32 %v1743_v48, %v1739_v46  ;;  %v564_v9 = vmul.f32 %v1743_v48, %v1741_v47 }
 0x15d   : > { %v509_v10 = vsub.f32 %v497_v61, %v505_v1  ;;  %v510_v11 = vsub.f32 %v498_v62, %v506_v2  ;;  %v511_v12 = vsub.f32 %v499_v63, %v507_v3  ;;  %v512_v13 = vsub.f32 %v500_v0, %v508_v4 }
 0x15e   : > { %v569_v14 = vrot.slane %v561_v6, 1  ;;  %v570_v15 = vrot.slane %v562_v7, 1  ;;  %v571_v16 = vrot.slane %v563_v8, 1  ;;  %v572_v17 = vrot.slane %v564_v9, 1 }
 0x15f   : > { %v581_v18 = vmul.f32 %v1751_v53, %v1757_v56  ;;  %v582_v19 = vmul.f32 %v1751_v53, %v1759_v58  ;;  %v583_v20 = vmul.f32 %v1751_v53, %v1761_v59  ;;  %v584_v21 = vmul.f32 %v1751_v53, %v1763_v60 }
 0x160   : > { %v577_v22 = vadd.f32 %v569_v14, %v509_v10  ;;  %v578_v23 = vadd.f32 %v570_v15, %v510_v11  ;;  %v579_v24 = vadd.f32 %v571_v16, %v511_v12  ;;  %v580_v25 = vadd.f32 %v572_v17, %v512_v13 }
 0x161   : > { %v589_v26 = vrot.slane %v581_v18, 1  ;;  %v590_v27 = vrot.slane %v582_v19, 1  ;;  %v591_v28 = vrot.slane %v583_v20, 1  ;;  %v592_v29 = vrot.slane %v584_v21, 1 }
 0x162   : > { %v649_v30 = vmul.f32 %v1745_v49, %v1733_v43  ;;  %v650_v31 = vmul.f32 %v1745_v49, %v1737_v45  ;;  %v651_v32 = vmul.f32 %v1745_v49, %v1739_v46  ;;  %v652_v33 = vmul.f32 %v1745_v49, %v1741_v47 }
 0x163   : > { %v597_v34 = vsub.f32 %v577_v22, %v589_v26  ;;  %v598_v35 = vsub.f32 %v578_v23, %v590_v27  ;;  %v599_v36 = vsub.f32 %v579_v24, %v591_v28  ;;  %v600_v37 = vsub.f32 %v580_v25, %v592_v29 }
 0x164   : > { %v657_v38 = vrot.slane %v649_v30, 2  ;;  %v658_v39 = vrot.slane %v650_v31, 2  ;;  %v659_v40 = vrot.slane %v651_v32, 2  ;;  %v660_v41 = vrot.slane %v652_v33, 2 }
 0x165   : > { %v669_v42 = vmul.f32 %v1753_v54, %v1757_v56  ;;  %v670_v51 = vmul.f32 %v1753_v54, %v1759_v58  ;;  %v671_v57 = vmul.f32 %v1753_v54, %v1761_v59  ;;  %v672_v61 = vmul.f32 %v1753_v54, %v1763_v60 }
 0x166   : > { %v665_v62 = vadd.f32 %v657_v38, %v597_v34  ;;  %v666_v63 = vadd.f32 %v658_v39, %v598_v35  ;;  %v667_v0 = vadd.f32 %v659_v40, %v599_v36  ;;  %v668_v1 = vadd.f32 %v660_v41, %v600_v37 }
 0x167   : > { %v677_v2 = vrot.slane %v669_v42, 2  ;;  %v678_v3 = vrot.slane %v670_v51, 2  ;;  %v679_v4 = vrot.slane %v671_v57, 2  ;;  %v680_v5 = vrot.slane %v672_v61, 2 }
 0x168   : > { %v737_v6 = vmul.f32 %v1747_v50, %v1733_v43  ;;  %v738_v7 = vmul.f32 %v1747_v50, %v1737_v45  ;;  %v739_v8 = vmul.f32 %v1747_v50, %v1739_v46  ;;  %v740_v9 = vmul.f32 %v1747_v50, %v1741_v47 }
 0x169   : > { %v685_v10 = vsub.f32 %v665_v62, %v677_v2  ;;  %v686_v11 = vsub.f32 %v666_v63, %v678_v3  ;;  %v687_v12 = vsub.f32 %v667_v0, %v679_v4  ;;  %v688_v13 = vsub.f32 %v668_v1, %v680_v5 }
 0x16a   : > { %v745_v14 = vrot.slane %v737_v6, 3  ;;  %v746_v15 = vrot.slane %v738_v7, 3  ;;  %v747_v16 = vrot.slane %v739_v8, 3  ;;  %v748_v17 = vrot.slane %v740_v9, 3 }
 0x16b   : > { %v757_v18 = vmul.f32 %v1755_v55, %v1757_v56  ;;  %v758_v19 = vmul.f32 %v1755_v55, %v1759_v58  ;;  %v759_v20 = vmul.f32 %v1755_v55, %v1761_v59  ;;  %v760_v21 = vmul.f32 %v1755_v55, %v1763_v60 }
 0x16c   : > { %v753_v22 = vadd.f32 %v745_v14, %v685_v10  ;;  %v754_v23 = vadd.f32 %v746_v15, %v686_v11  ;;  %v755_v24 = vadd.f32 %v747_v16, %v687_v12  ;;  %v756_v25 = vadd.f32 %v748_v17, %v688_v13 }
 0x16d   : > { %v765_v26 = vrot.slane %v757_v18, 3  ;;  %v766_v27 = vrot.slane %v758_v19, 3  ;;  %v767_v28 = vrot.slane %v759_v20, 3  ;;  %v768_v29 = vrot.slane %v760_v21, 3 }
 0x16e   : > { %v477_v30 = vmul.f32 %v1735_v44, %v1757_v56  ;;  %v478_v31 = vmul.f32 %v1735_v44, %v1759_v58  ;;  %v479_v32 = vmul.f32 %v1735_v44, %v1761_v59  ;;  %v480_v33 = vmul.f32 %v1735_v44, %v1763_v60 }
 0x16f   : > { %v773_v34 = vsub.f32 %v753_v22, %v765_v26  ;;  %v774_v35 = vsub.f32 %v754_v23, %v766_v27  ;;  %v775_v36 = vsub.f32 %v755_v24, %v767_v28  ;;  %v776_v37 = vsub.f32 %v756_v25, %v768_v29 }
 0x170   : > { %v489_v38 = vmul.f32 %v1749_v52, %v1733_v43  ;;  %v490_v39 = vmul.f32 %v1749_v52, %v1737_v45  ;;  %v491_v40 = vmul.f32 %v1749_v52, %v1739_v46  ;;  %v492_v41 = vmul.f32 %v1749_v52, %v1741_v47 }
 0x171   : > { %v795_v42 = vrot.slane %v774_v35, 7  ;;  %v797_v51 = vrot.slane %v775_v36, 6  ;;  %v799_v57 = vrot.slane %v776_v37, 5  ;;  %v517_v44 = vmul.f32 %v1743_v48, %v1757_v56 }
 0x172   : > { %v493_v61 = vadd.f32 %v489_v38, %v477_v30  ;;  %v494_v62 = vadd.f32 %v490_v39, %v478_v31  ;;  %v495_v63 = vadd.f32 %v491_v40, %v479_v32  ;;  %v496_v0 = vadd.f32 %v492_v41, %v480_v33 }
 0x173   : > { %v796_v1 = vsel %vm782_vm0, %v795_v42, %v773_v34  ;;  %v518_v2 = vmul.f32 %v1743_v48, %v1759_v58  ;;  %v519_v3 = vmul.f32 %v1743_v48, %v1761_v59  ;;  %v520_v52 = vmul.f32 %v1743_v48, %v1763_v60 }
 0x174   : > { %v798_v4 = vsel %vm785_vm1, %v797_v51, %v796_v1  ;;  %v525_v5 = vrot.slane %v517_v44, 1  ;;  %v541_v6 = vmul.f32 %v1751_v53, %v1733_v43  ;;  %v542_v7 = vmul.f32 %v1751_v53, %v1737_v45 }
 0x175   : > { %v800_v8 = vsel %vm788_vm2, %v799_v57, %v798_v4  ;;  %v526_v9 = vrot.slane %v518_v2, 1  ;;  %v527_v10 = vrot.slane %v519_v3, 1  ;;  %v528_v11 = vrot.slane %v520_v52, 1 }
 0x176   : > { %v803_v12 = vpack.c.bf16 %v800_v8, %v800_v8  ;;  %v533_v13 = vadd.f32 %v525_v5, %v493_v61  ;;  %v543_v14 = vmul.f32 %v1751_v53, %v1739_v46  ;;  %v544_v48 = vmul.f32 %v1751_v53, %v1741_v47 }
 0x177   : > { %v534_v15 = vadd.f32 %v526_v9, %v494_v62  ;;  %v535_v16 = vadd.f32 %v527_v10, %v495_v63  ;;  %v536_v17 = vadd.f32 %v528_v11, %v496_v0  ;;  %v549_v18 = vrot.slane %v541_v6, 1 }
 0x178   : > { %964 = vmatprep.mubr.bf16.mxu1 %v803_v12  ;;  %v550_v19 = vrot.slane %v542_v7, 1  ;;  %v551_v20 = vrot.slane %v543_v14, 1  ;;  %v552_v21 = vrot.slane %v544_v48, 1  ;;  %v605_v22 = vmul.f32 %v1745_v49, %v1757_v56 }
 0x179   : > { %v557_v23 = vadd.f32 %v549_v18, %v533_v13  ;;  %v606_v24 = vmul.f32 %v1745_v49, %v1759_v58  ;;  %v607_v25 = vmul.f32 %v1745_v49, %v1761_v59  ;;  %v608_v53 = vmul.f32 %v1745_v49, %v1763_v60 }
 0x17a   : > { %v558_v26 = vadd.f32 %v550_v19, %v534_v15  ;;  %v559_v27 = vadd.f32 %v551_v20, %v535_v16  ;;  %v560_v28 = vadd.f32 %v552_v21, %v536_v17  ;;  %v613_v29 = vrot.slane %v605_v22, 2  ;;  %v976_v19 = vpop.permute.xlu0 %975 }
 0x17b   : > { %v614_v30 = vrot.slane %v606_v24, 2  ;;  %v615_v31 = vrot.slane %v607_v25, 2  ;;  %v616_v32 = vrot.slane %v608_v53, 2  ;;  %v629_v33 = vmul.f32 %v1753_v54, %v1733_v43 }
 0x17c   : > { %v621_v34 = vadd.f32 %v613_v29, %v557_v23  ;;  %v630_v35 = vmul.f32 %v1753_v54, %v1737_v45  ;;  %v631_v36 = vmul.f32 %v1753_v54, %v1739_v46  ;;  %v632_v49 = vmul.f32 %v1753_v54, %v1741_v47 }
 0x17d   : > { %v622_v37 = vadd.f32 %v614_v30, %v558_v26  ;;  %v623_v38 = vadd.f32 %v615_v31, %v559_v27  ;;  %v624_v39 = vadd.f32 %v616_v32, %v560_v28  ;;  %v637_v40 = vrot.slane %v629_v33, 2 }
 0x17e   : > { %v638_v41 = vrot.slane %v630_v35, 2  ;;  %v639_v42 = vrot.slane %v631_v36, 2  ;;  %v640_v51 = vrot.slane %v632_v49, 2  ;;  %v693_v57 = vmul.f32 %v1747_v50, %v1757_v56 }
 0x17f   : > { %v694_v44 = vmul.f32 %v1747_v50, %v1759_v58  ;;  %v695_v61 = vmul.f32 %v1747_v50, %v1761_v59  ;;  %v696_v62 = vmul.f32 %v1747_v50, %v1763_v60  ;;  %v645_v54 = vadd.f32 %v637_v40, %v621_v34 }
 0x180   : > { %v646_v63 = vadd.f32 %v638_v41, %v622_v37  ;;  %v647_v0 = vadd.f32 %v639_v42, %v623_v38  ;;  %v648_v1 = vadd.f32 %v640_v51, %v624_v39  ;;  %v701_v2 = vrot.slane %v693_v57, 3 }
 0x181   : > { %v702_v3 = vrot.slane %v694_v44, 3  ;;  %v703_v52 = vrot.slane %v695_v61, 3  ;;  %v704_v4 = vrot.slane %v696_v62, 3  ;;  %v717_v56 = vmul.f32 %v1755_v55, %v1733_v43 }
 0x182   : > { %v718_v58 = vmul.f32 %v1755_v55, %v1737_v45  ;;  %v719_v59 = vmul.f32 %v1755_v55, %v1739_v46  ;;  %v720_v50 = vmul.f32 %v1755_v55, %v1741_v47  ;;  %v709_v7 = vadd.f32 %v701_v2, %v645_v54 }
 0x183   : > { %v710_v60 = vadd.f32 %v702_v3, %v646_v63  ;;  %v711_v5 = vadd.f32 %v703_v52, %v647_v0  ;;  %v712_v6 = vadd.f32 %v704_v4, %v648_v1  ;;  %v725_v11 = vrot.slane %v717_v56, 3 }
 0x184   : > { %v726_v8 = vrot.slane %v718_v58, 3  ;;  %v727_v9 = vrot.slane %v719_v59, 3  ;;  %v728_v10 = vrot.slane %v720_v50, 3 }
 0x185   : > { %v733_v45 = vadd.f32 %v725_v11, %v709_v7 }
 0x186   : > { %v734_v12 = vadd.f32 %v726_v8, %v710_v60  ;;  %v735_v43 = vadd.f32 %v727_v9, %v711_v5  ;;  %v736_v13 = vadd.f32 %v728_v10, %v712_v6 }
 0x188   : > { %v781_v14 = vrot.slane %v734_v12, 7  ;;  %v784_v48 = vrot.slane %v735_v43, 6  ;;  %v787_v15 = vrot.slane %v736_v13, 5 }
 0x18a   : > { %v783_v46 = vsel %vm782_vm0, %v781_v14, %v733_v45 }
 0x18b   : > { %v786_v47 = vsel %vm785_vm1, %v784_v48, %v783_v46 }
 0x18c   : > { %v789_v55 = vsel %vm788_vm2, %v787_v15, %v786_v47 }
 0x18d   : > { %v802_v16 = vpack.c.bf16 %v789_v55, %v789_v55 }
 0x18f   : > { %965 = vmatmul.mubr.bf16.vlgmr.msra.gmra.mxu1 %v802_v16 }
 0x24f   : > { %v1170_v17 = vpop.f32.mrf.mxu1 }
 0x251   : > { %v1171_v18 = vpop.f32.mrf.mxu1 }
 0x252   : > { %v1172_v20 = vadd.f32 %v1171_v18, %v1170_v17 }
 0x253   : > { %v1173_v21 = vpop.f32.mrf.mxu1 }
 0x254   : > { %v978_v22 = vadd.f32 %v1172_v20, %v976_v19 }
 0x255   : > { %v1174_v23 = vpop.f32.mrf.mxu1 }
 0x256   : > { %979 = vst [vmem:[%s324_s10] sm:$0xf] %v978_v22 }
 0x257   : > { %1454 = shalt.err (!%p1451_p11)
}
 0x258   : > { %s1455_s13 = scalar_lea.hbm %s1905_s20, 64  ;;  %s1459_s1 = scalar_lea.hbm %s1948_s6, 128 }
 0x259   : > { %p1456_p13 = scmp.ne.s32.totalorder %s1905_s20, %s1455_s13  ;;  %p1460_p4 = scmp.lt.s32.totalorder %s1905_s20, %s1948_s6 }
 0x25a   : > { %p1461_p6 = scmp.lt.s32.totalorder %s1459_s1, %s1455_s13 }
 0x25b   : > { %p1457_p1 = pnand %p1456_p13, %p1968_p7 }
 0x25c   : > { %p1462_p2 = por %p1461_p6, %p1460_p4 }
 0x25d   : > { %p1458_p3 = pneg %p1457_p1 }
 0x25f   : > { %p1463_p8 = pnand %p1462_p2, %p1458_p3 }
 0x261   : > { %1466 = shalt.err (!%p1463_p8)
}
 0x262   : > { %1194 = dma.vmem_to_hbm [thread:$0]  (%p1968_p7), %s995_s11, 64, %s1905_s20, %s981_s30  }
 0x263 PF: > { %s1006_s7 = sand.u32 1, %s1501_s21   ;;  %p1969_p10 = scmp.ne.s32.totalorder %s1960_s19, 0 }
 0x264   : > { %p1970_p0 = scmp.ge.s32.totalorder %s1513_s24, 2  ;;  %s1007_s10 = scalar_lea.sflag [#allocation4], %s1006_s7 }
 0x266   : > { %p1214_p12 = pnand %p1970_p0, %p1969_p10 }
 0x268   : > { %p1215_p5 = pneg %p1214_p12 }
 0x26a   : > { %1496 = dma.done.wait (%p1215_p5), %s1007_s10, 64  }
 0x26b   : > { %1498 = vsyncadd (%p1215_p5), %s1007_s10, 4294967232  ;;  %p21_p9 = scmp.ge.s32.totalorder %s1646_s29, 4   ;;  %s1971_s21 = smov %s1505_s22 }
 0x26c   : > { %s1972_s22 = smov %s1509_s23  ;;  %s1973_s23 = smov %s1657_s14 }
 0x26d   : > { %s1974_s24 = smov %s1646_s29  ;;  %23 = sbr.rel (!%p21_p9) target bundleno = 9 (0x9), region = 105 }
 0x272   :  { %1012 = vsyncpa [#allocation3], 1 }
 0x273   :  { %1014 = vsyncpa [#allocation3 + $0x1], 1 }
 0x274   :  { %1015 = vsyncpa [#allocation6], 1 }
 0x275   :  { %1016 = vsyncpa [#allocation9], 1 }
 0x276   :  { %1017 = vsyncpa [#allocation4], 1 }
 0x277   :  { %1019 = vsyncpa [#allocation4 + $0x1], 1 }

</bundles_post_ra>
